<compile_context>
chip_gen: v7x
topology: tpu7x:2x2x1
jax: 0.10.0
libtpu: 0.0.40
codegen_flags: <defaults>
</compile_context>

<pallas_src>
import math

import jax
import jax.numpy as jnp
import numpy as np
from jax.experimental import pallas as pl
from jax.experimental.pallas import tpu as pltpu


def _num_tensorcores():
    """Best-effort TensorCores-per-chip query (v7x: 2, v5e/v6e: 1)."""
    try:
        info = pltpu.get_tpu_info()
        for attr in ("num_tensorcores", "tensorcores_per_chip", "num_cores",
                     "cores_per_chip", "core_count"):
            n = getattr(info, attr, None)
            if n:
                return int(n)
    except Exception:
        pass
    return 1


def pack_td_encoder_weights(wq, wk, wv, wo, w1, w2, *, dtype=jnp.bfloat16):
    """One-time wrapper-side weight packing (hoist out of the step loop in a real model).

    Returns (wqkv, wo_p, w1_p, w2_p):
      wqkv : [D, 3*Dp]  Wq|Wk|Wv fused, 1/sqrt(D) folded into the Wq block,
                        each block zero-padded to Dp = round_up(D, 128) lanes.
      wo_p : [Dp, D]    Wo with zero-padded rows (padded ctx lanes are zero).
      w1_p : [D, d_ff]  conv1.weight[:, :, 0].T
      w2_p : [d_ff, D]  conv2.weight[:, :, 0].T
    All cast to `dtype` (bf16) so the DMA moves half the bytes; matmuls
    accumulate in f32 in-kernel.
    """
    D = wq.shape[0]
    Dp = ((D + 127) // 128) * 128
    inv_sqrt_d = 1.0 / math.sqrt(D)
    f32 = jnp.float32

    def pad_cols(w):
        return jnp.pad(w.astype(f32), ((0, 0), (0, Dp - D)))

    wqkv = jnp.concatenate(
        [pad_cols(wq.astype(f32) * inv_sqrt_d), pad_cols(wk), pad_cols(wv)],
        axis=1)                                               # [D, 3*Dp]
    wo_p = jnp.pad(wo.astype(f32), ((0, Dp - D), (0, 0)))     # [Dp, D]
    return (wqkv.astype(dtype), wo_p.astype(dtype),
            w1.astype(dtype), w2.astype(dtype))


def _td_encoder_kernel(bb, L, D, Dp, d_ff):
    """bb: number of sequences handled per grid step."""
    N = bb * L
    bf16 = jnp.bfloat16
    f32 = jnp.float32

    def kernel(x_ref, wqkv_ref, wo_ref, w1_ref, w2_ref, o_ref):
        # [bb, L, D] -> [bb*L, D]: leading-dim merge only (last dim unchanged).
        x2 = x_ref[...].reshape(N, D)                                   # f32
        xb = x2.astype(bf16)                                            # bf16 at MXU boundary only

        # Fused Q/K/V projection: one MXU problem.  Scale pre-folded into Wq;
        # Q/K/V blocks zero-padded to Dp lanes so the slices below are
        # vreg-aligned (no XLU lane shifts).
        qkv = jnp.dot(xb, wqkv_ref[...], preferred_element_type=f32)    # [N, 3*Dp]
        q = qkv[:, 0 * Dp:1 * Dp].astype(bf16).reshape(bb, L, Dp)
        k = qkv[:, 1 * Dp:2 * Dp].astype(bf16).reshape(bb, L, Dp)
        v = qkv[:, 2 * Dp:3 * Dp].astype(bf16).reshape(bb, L, Dp)

        # Per-sequence scaled dot-product attention (scale already in q).
        # Zero-padded lanes D..Dp contribute exactly 0 to the contraction.
        s = jnp.einsum("bqd,bkd->bqk", q, k, preferred_element_type=f32)  # [bb, L, L]
        s = s - jnp.max(s, axis=-1, keepdims=True)
        p = jnp.exp(s)
        # Exact divide (matches torch softmax); approx reciprocal removed per review.
        p = p / jnp.sum(p, axis=-1, keepdims=True)

        ctx = jnp.einsum("bqk,bkd->bqd", p.astype(bf16), v,
                         preferred_element_type=f32)                       # [bb, L, Dp]
        attn_out = jnp.dot(ctx.reshape(N, Dp).astype(bf16), wo_ref[...],
                           preferred_element_type=f32)                     # [N, D]

        # Residual (dropout == identity in eval).  Element-wise math stays f32.
        h = x2 + attn_out

        # FFN: conv1 (1x1, D->d_ff) + relu + conv2 (1x1, d_ff->D) as matmuls.
        y1 = jnp.maximum(
            jnp.dot(h.astype(bf16), w1_ref[...], preferred_element_type=f32), 0.0)
        res = jnp.dot(y1.astype(bf16), w2_ref[...], preferred_element_type=f32)

        o_ref[...] = res.reshape(bb, L, D).astype(o_ref.dtype)

    return kernel


def td_encoder_layer(x, packed_weights, *, batch_blocks=None, vmem_limit_bytes=None):
    """x: [B, L, D] f32; packed_weights from pack_td_encoder_weights().

    batch_blocks=None  -> chip-aware default (>=2 'parallel' steps if 2 TCs detected,
                          else a single fully-collapsed step).
    vmem_limit_bytes   -> pass explicitly at production shapes (with seq tiling) on v7x.
    """
    wqkv, wo_p, w1_p, w2_p = packed_weights
    B, L, D = x.shape
    Dp = wqkv.shape[1] // 3
    d_ff = w1_p.shape[1]

    if batch_blocks is None:
        batch_blocks = 2 if (_num_tensorcores() >= 2 and B % 2 == 0) else 1
    assert B % batch_blocks == 0, "B must be divisible by batch_blocks"
    bb = B // batch_blocks

    # Grid-invariant weights: constant index_map -> fetched once.  With more
    # than one grid step, single-buffer them (no need for the default 2 buffers).
    use_single_buffer = batch_blocks > 1 and hasattr(pl, "Buffered")

    def weight_spec(shape):
        if use_single_buffer:
            try:
                return pl.BlockSpec(shape, lambda i: (0, 0),
                                    pipeline_mode=pl.Buffered(1))
            except TypeError:
                pass  # older API without pipeline_mode: fall back to default buffering
        return pl.BlockSpec(shape, lambda i: (0, 0))

    # Advisory cost estimate so XLA schedules neighbors around the custom call.
    flops = int(B * L * (2 * D * 3 * Dp      # qkv projection
                         + 4 * L * Dp        # scores + ctx
                         + 2 * Dp * D        # Wo projection
                         + 4 * D * d_ff))    # FFN
    bytes_accessed = int(2 * B * L * D * 4
                         + 2 * (wqkv.size + wo_p.size + w1_p.size + w2_p.size))
    cost = pl.CostEstimate(flops=flops, transcendentals=int(B * L * L),
                           bytes_accessed=bytes_accessed)

    return pl.pallas_call(
        _td_encoder_kernel(bb, L, D, Dp, d_ff),
        out_shape=jax.ShapeDtypeStruct((B, L, D), x.dtype),
        grid_spec=pltpu.PrefetchScalarGridSpec(
            num_scalar_prefetch=0,
            grid=(batch_blocks,),
            in_specs=[
                pl.BlockSpec((bb, L, D), lambda i: (i, 0, 0)),  # activations
                weight_spec((D, 3 * Dp)),                       # fused (scaled, padded) Wqkv
                weight_spec((Dp, D)),                           # Wo (row-padded)
                weight_spec((D, d_ff)),                         # conv1 weight as matmul
                weight_spec((d_ff, D)),                         # conv2 weight as matmul
            ],
            out_specs=pl.BlockSpec((bb, L, D), lambda i: (i, 0, 0)),
        ),
        compiler_params=pltpu.CompilerParams(
            dimension_semantics=("parallel",),
            vmem_limit_bytes=vmem_limit_bytes),
        cost_estimate=cost,
    )(x, wqkv, wo_p, w1_p, w2_p)


def reference_f32(x, wq, wk, wv, wo, w1, w2):
    """Pure-JAX f32 reference of the module forward (semantic ground truth)."""
    D = x.shape[-1]
    q = x @ wq
    k = x @ wk
    v = x @ wv
    s = jnp.einsum("bqd,bkd->bqk", q, k) / math.sqrt(D)
    p = jax.nn.softmax(s, axis=-1)
    attn_out = jnp.einsum("bqk,bkd->bqd", p, v) @ wo
    h = x + attn_out
    y1 = jnp.maximum(h @ w1, 0.0)
    return y1 @ w2


def reference_bf16_boundaries(x, wq, wk, wv, wo, w1, w2):
    """Same forward with bf16 operands at every dot boundary / f32 accumulation,
    mirroring the kernel's precision choices (tight-tolerance check)."""
    bf16, f32 = jnp.bfloat16, jnp.float32
    D = x.shape[-1]
    inv_sqrt_d = 1.0 / math.sqrt(D)
    c = lambda a: a.astype(bf16)
    q = jnp.dot(c(x), c(wq.astype(f32) * inv_sqrt_d), preferred_element_type=f32)
    k = jnp.dot(c(x), c(wk), preferred_element_type=f32)
    v = jnp.dot(c(x), c(wv), preferred_element_type=f32)
    s = jnp.einsum("bqd,bkd->bqk", c(q), c(k), preferred_element_type=f32)
    s = s - jnp.max(s, axis=-1, keepdims=True)
    p = jnp.exp(s)
    p = p / jnp.sum(p, axis=-1, keepdims=True)
    ctx = jnp.einsum("bqk,bkd->bqd", c(p), c(v), preferred_element_type=f32)
    attn_out = jnp.dot(c(ctx), c(wo), preferred_element_type=f32)
    h = x + attn_out
    y1 = jnp.maximum(jnp.dot(c(h), c(w1), preferred_element_type=f32), 0.0)
    return jnp.dot(c(y1), c(w2), preferred_element_type=f32)


if __name__ == "__main__":
    # Small shapes consistent with the module: batch=2, seq=8, d_model=32,
    # d_ff = 4 * d_model = 128.
    B, L, D = 2, 8, 32
    d_ff = 4 * D

    key = jax.random.PRNGKey(0)
    kx, kq, kk, kv, ko, k1, k2 = jax.random.split(key, 7)

    x = jax.random.normal(kx, (B, L, D), dtype=jnp.float32)
    scale_d = 1.0 / math.sqrt(D)
    wq = jax.random.normal(kq, (D, D), dtype=jnp.float32) * scale_d
    wk = jax.random.normal(kk, (D, D), dtype=jnp.float32) * scale_d
    wv = jax.random.normal(kv, (D, D), dtype=jnp.float32) * scale_d
    wo = jax.random.normal(ko, (D, D), dtype=jnp.float32) * scale_d
    # conv1.weight is [d_ff, D, 1] in PyTorch; stored transposed as [D, d_ff].
    w1 = jax.random.normal(k1, (D, d_ff), dtype=jnp.float32) * scale_d
    # conv2.weight is [D, d_ff, 1] in PyTorch; stored transposed as [d_ff, D].
    w2 = jax.random.normal(k2, (d_ff, D), dtype=jnp.float32) * (1.0 / math.sqrt(d_ff))

    packed = pack_td_encoder_weights(wq, wk, wv, wo, w1, w2)

    ref32 = jax.block_until_ready(reference_f32(x, wq, wk, wv, wo, w1, w2))
    refbf = jax.block_until_ready(reference_bf16_boundaries(x, wq, wk, wv, wo, w1, w2))

    # Fully collapsed grid (single step) -- optimal on single-TC v5e/v6e.
    out1 = jax.block_until_ready(td_encoder_layer(x, packed, batch_blocks=1))
    # 2-way 'parallel' batch axis -- feeds both v7x TensorCores (also correct on 1-TC chips).
    out2 = jax.block_until_ready(td_encoder_layer(x, packed, batch_blocks=2))
    # Chip-aware default (selects between the two via TensorCore count).
    out_auto = jax.block_until_ready(td_encoder_layer(x, packed))

    for out in (out1, out2, out_auto):
        # Tight check against the bf16-boundary reference (same precision plan):
        np.testing.assert_allclose(np.asarray(out), np.asarray(refbf),
                                   rtol=2e-3, atol=2e-3)
        # Semantic check against the pure-f32 reference; 5e-2 bound documents the
        # expected bf16-operand rounding error (~2^-9 per operand through 5 matmuls).
        np.testing.assert_allclose(np.asarray(out), np.asarray(ref32),
                                   rtol=5e-2, atol=5e-2)

    print("KERNEL_OK")
</pallas_src>

<mosaic_0001>
module attributes {stable_mosaic.version = 11 : i64} {
  func.func @kernel(%arg0: i32, %arg1: memref<2x8x32xf32, #tpu.memory_space<vmem>>, %arg2: memref<32x384xbf16, #tpu.memory_space<vmem>>, %arg3: memref<128x32xbf16, #tpu.memory_space<vmem>>, %arg4: memref<32x128xbf16, #tpu.memory_space<vmem>>, %arg5: memref<128x32xbf16, #tpu.memory_space<vmem>>, %arg6: memref<2x8x32xf32, #tpu.memory_space<vmem>>) attributes {dimension_semantics = [#tpu.dimension_semantics<parallel>], iteration_bounds = array<i64: 1>, scalar_prefetch = 0 : i64, scratch_operands = 0 : i64, tpu.core_type = #tpu.core_type<tc>, window_params = [{transform_indices = @transform_0, window_bounds = array<i64: 2, 8, 32>}, {pipeline_mode = #tpu.pipeline_mode<synchronous>, transform_indices = @transform_1, window_bounds = array<i64: 32, 384>}, {pipeline_mode = #tpu.pipeline_mode<synchronous>, transform_indices = @transform_2, window_bounds = array<i64: 128, 32>}, {pipeline_mode = #tpu.pipeline_mode<synchronous>, transform_indices = @transform_3, window_bounds = array<i64: 32, 128>}, {pipeline_mode = #tpu.pipeline_mode<synchronous>, transform_indices = @transform_4, window_bounds = array<i64: 128, 32>}, {transform_indices = @transform_5, window_bounds = array<i64: 2, 8, 32>}]} {
    %c0 = arith.constant 0 : index
    %c0_0 = arith.constant 0 : index
    %c0_1 = arith.constant 0 : index
    %0 = vector.load %arg1[%c0, %c0_0, %c0_1] : memref<2x8x32xf32, #tpu.memory_space<vmem>>, vector<2x8x32xf32>
    %1 = vector.shape_cast %0 : vector<2x8x32xf32> to vector<16x32xf32>
    %2 = arith.truncf %1 : vector<16x32xf32> to vector<16x32xbf16>
    %c0_2 = arith.constant 0 : index
    %c0_3 = arith.constant 0 : index
    %3 = vector.load %arg2[%c0_2, %c0_3] : memref<32x384xbf16, #tpu.memory_space<vmem>>, vector<32x384xbf16>
    %cst = arith.constant dense<0.000000e+00> : vector<16x384xf32>
    %4 = tpu.matmul %2, %3, %cst {dimension_numbers = #tpu.dot_dimension_numbers<[1], [0], [0], [1], [0, 0, 1, 1], [], []>} : vector<16x32xbf16>, vector<32x384xbf16>, vector<16x384xf32> -> vector<16x384xf32>
    %5 = vector.extract_strided_slice %4 {offsets = [0, 0], sizes = [16, 128], strides = [1, 1]} : vector<16x384xf32> to vector<16x128xf32>
    %6 = arith.truncf %5 : vector<16x128xf32> to vector<16x128xbf16>
    %7 = vector.shape_cast %6 : vector<16x128xbf16> to vector<2x8x128xbf16>
    %8 = vector.extract_strided_slice %4 {offsets = [0, 128], sizes = [16, 128], strides = [1, 1]} : vector<16x384xf32> to vector<16x128xf32>
    %9 = arith.truncf %8 : vector<16x128xf32> to vector<16x128xbf16>
    %10 = vector.shape_cast %9 : vector<16x128xbf16> to vector<2x8x128xbf16>
    %11 = vector.extract_strided_slice %4 {offsets = [0, 256], sizes = [16, 128], strides = [1, 1]} : vector<16x384xf32> to vector<16x128xf32>
    %12 = arith.truncf %11 : vector<16x128xf32> to vector<16x128xbf16>
    %13 = vector.shape_cast %12 : vector<16x128xbf16> to vector<2x8x128xbf16>
    "tpu.trace_start"() <{level = 10 : i32, message = "bqd,bkd->bqk"}> : () -> ()
    %cst_4 = arith.constant dense<0.000000e+00> : vector<2x8x8xf32>
    %14 = tpu.matmul %7, %10, %cst_4 {dimension_numbers = #tpu.dot_dimension_numbers<[2], [2], [1], [1], [0, 0, 0, 1, 1, 1], [0], [0]>} : vector<2x8x128xbf16>, vector<2x8x128xbf16>, vector<2x8x8xf32> -> vector<2x8x8xf32>
    "tpu.trace_stop"() : () -> ()
    %cst_5 = arith.constant dense<0xFF800000> : vector<2x8xf32>
    %15 = vector.multi_reduction <maximumf>, %14, %cst_5 [2] : vector<2x8x8xf32> to vector<2x8xf32>
    %16 = vector.shape_cast %15 : vector<2x8xf32> to vector<2x8x1xf32>
    %17 = vector.broadcast %16 : vector<2x8x1xf32> to vector<2x8x8xf32>
    %18 = arith.subf %14, %17 : vector<2x8x8xf32>
    %19 = math.exp %18 : vector<2x8x8xf32>
    %cst_6 = arith.constant dense<0.000000e+00> : vector<2x8xf32>
    %20 = vector.multi_reduction <add>, %19, %cst_6 [2] : vector<2x8x8xf32> to vector<2x8xf32>
    %21 = vector.shape_cast %20 : vector<2x8xf32> to vector<2x8x1xf32>
    %22 = vector.broadcast %21 : vector<2x8x1xf32> to vector<2x8x8xf32>
    %23 = arith.divf %19, %22 : vector<2x8x8xf32>
    %24 = arith.truncf %23 : vector<2x8x8xf32> to vector<2x8x8xbf16>
    "tpu.trace_start"() <{level = 10 : i32, message = "bqk,bkd->bqd"}> : () -> ()
    %cst_7 = arith.constant dense<0.000000e+00> : vector<2x8x128xf32>
    %25 = tpu.matmul %24, %13, %cst_7 {dimension_numbers = #tpu.dot_dimension_numbers<[2], [1], [1], [2], [0, 0, 0, 1, 1, 2], [0], [0]>} : vector<2x8x8xbf16>, vector<2x8x128xbf16>, vector<2x8x128xf32> -> vector<2x8x128xf32>
    "tpu.trace_stop"() : () -> ()
    %26 = vector.shape_cast %25 : vector<2x8x128xf32> to vector<16x128xf32>
    %27 = arith.truncf %26 : vector<16x128xf32> to vector<16x128xbf16>
    %c0_8 = arith.constant 0 : index
    %c0_9 = arith.constant 0 : index
    %28 = vector.load %arg3[%c0_8, %c0_9] : memref<128x32xbf16, #tpu.memory_space<vmem>>, vector<128x32xbf16>
    %cst_10 = arith.constant dense<0.000000e+00> : vector<16x32xf32>
    %29 = tpu.matmul %27, %28, %cst_10 {dimension_numbers = #tpu.dot_dimension_numbers<[1], [0], [0], [1], [0, 0, 1, 1], [], []>} : vector<16x128xbf16>, vector<128x32xbf16>, vector<16x32xf32> -> vector<16x32xf32>
    %30 = arith.addf %1, %29 : vector<16x32xf32>
    %31 = arith.truncf %30 : vector<16x32xf32> to vector<16x32xbf16>
    %c0_11 = arith.constant 0 : index
    %c0_12 = arith.constant 0 : index
    %32 = vector.load %arg4[%c0_11, %c0_12] : memref<32x128xbf16, #tpu.memory_space<vmem>>, vector<32x128xbf16>
    %cst_13 = arith.constant dense<0.000000e+00> : vector<16x128xf32>
    %33 = tpu.matmul %31, %32, %cst_13 {dimension_numbers = #tpu.dot_dimension_numbers<[1], [0], [0], [1], [0, 0, 1, 1], [], []>} : vector<16x32xbf16>, vector<32x128xbf16>, vector<16x128xf32> -> vector<16x128xf32>
    %cst_14 = arith.constant 0.000000e+00 : f32
    %34 = vector.broadcast %cst_14 : f32 to vector<16x128xf32>
    %35 = arith.maximumf %33, %34 : vector<16x128xf32>
    %36 = arith.truncf %35 : vector<16x128xf32> to vector<16x128xbf16>
    %c0_15 = arith.constant 0 : index
    %c0_16 = arith.constant 0 : index
    %37 = vector.load %arg5[%c0_15, %c0_16] : memref<128x32xbf16, #tpu.memory_space<vmem>>, vector<128x32xbf16>
    %cst_17 = arith.constant dense<0.000000e+00> : vector<16x32xf32>
    %38 = tpu.matmul %36, %37, %cst_17 {dimension_numbers = #tpu.dot_dimension_numbers<[1], [0], [0], [1], [0, 0, 1, 1], [], []>} : vector<16x128xbf16>, vector<128x32xbf16>, vector<16x32xf32> -> vector<16x32xf32>
    %39 = vector.shape_cast %38 : vector<16x32xf32> to vector<2x8x32xf32>
    %c0_18 = arith.constant 0 : index
    %c0_19 = arith.constant 0 : index
    %c0_20 = arith.constant 0 : index
    %40 = vector.load %arg6[%c0_18, %c0_19, %c0_20] : memref<2x8x32xf32, #tpu.memory_space<vmem>>, vector<2x8x32xf32>
    tpu.vector_store %arg6[%c0_18, %c0_19, %c0_20], %39 {strides = array<i32>} : memref<2x8x32xf32, #tpu.memory_space<vmem>>, vector<2x8x32xf32>,
    return
  }
  func.func @transform_0(%arg0: i32) -> (i32, i32, i32) {
    %c0_i32 = arith.constant 0 : i32
    %c0_i32_0 = arith.constant 0 : i32
    %c0_i32_1 = arith.constant 0 : i32
    return %arg0, %c0_i32, %c0_i32_0 : i32, i32, i32
  }
  func.func @transform_1(%arg0: i32) -> (i32, i32) {
    %c0_i32 = arith.constant 0 : i32
    %c0_i32_0 = arith.constant 0 : i32
    %c0_i32_1 = arith.constant 0 : i32
    return %c0_i32, %c0_i32_0 : i32, i32
  }
  func.func @transform_2(%arg0: i32) -> (i32, i32) {
    %c0_i32 = arith.constant 0 : i32
    %c0_i32_0 = arith.constant 0 : i32
    %c0_i32_1 = arith.constant 0 : i32
    return %c0_i32, %c0_i32_0 : i32, i32
  }
  func.func @transform_3(%arg0: i32) -> (i32, i32) {
    %c0_i32 = arith.constant 0 : i32
    %c0_i32_0 = arith.constant 0 : i32
    %c0_i32_1 = arith.constant 0 : i32
    return %c0_i32, %c0_i32_0 : i32, i32
  }
  func.func @transform_4(%arg0: i32) -> (i32, i32) {
    %c0_i32 = arith.constant 0 : i32
    %c0_i32_0 = arith.constant 0 : i32
    %c0_i32_1 = arith.constant 0 : i32
    return %c0_i32, %c0_i32_0 : i32, i32
  }
  func.func @transform_5(%arg0: i32) -> (i32, i32, i32) {
    %c0_i32 = arith.constant 0 : i32
    %c0_i32_0 = arith.constant 0 : i32
    %c0_i32_1 = arith.constant 0 : i32
    return %arg0, %c0_i32, %c0_i32_0 : i32, i32, i32
  }
}

</mosaic_0001>

<bundles_post_ra>
// kernel: tpu_custom_call.1
= control target key start
LH: loop header
LB: loop body
LE: loop exit
PB: predicated region body
PF: predicated region fallthrough
CT: control target
= control target key end

     0   :  { %v885_v2 = vmov 0   ;;  %v886_v6 = vmov 0.0   ;;  %vm65_vm0 = vcmask 261120   ;;  %s1070_s0 = inlined_call_operand.vmem [shape: f32[2,8,32], index: 0, kind: input, shape index: {}]   ;;  %s1071_s1 = inlined_call_operand.vmem [shape: bf16[32,384], index: 1, kind: input, shape index: {}]   ;;  %s1072_s2 = inlined_call_operand.vmem [shape: bf16[128,32], index: 2, kind: input, shape index: {}]   ;;  %s1073_s3 = inlined_call_operand.vmem [shape: bf16[32,128], index: 3, kind: input, shape index: {}]   ;;  %s1074_s4 = inlined_call_operand.vmem [shape: bf16[128,32], index: 4, kind: input, shape index: {}]   ;;  %s1075_s5 = inlined_call_operand.hbm [shape: f32[2,8,32], index: 5, kind: output, shape index: {}]  }
   0x1   :  { %v827_v0 = vld [vmem:[%s1071_s1 + $0x4] ss:$12 sps:$4 sm:$0xff]   ;;  %v829_v1 = vld [vmem:[%s1071_s1] ss:$12 sps:$4 sm:$0xff]   ;;  %101 = vmatprep.mubr.bf16.mxu0 %v885_v2  ;;  %v830_v3 = vld [vmem:[%s1071_s1 + $0x1c] ss:$12 sps:$4 sm:$0xff]   ;;  %741 = vmatprep.subr.bf16.mxu1 %v886_v6 }
   0x2   :  { %69 = vmatprep.subr.bf16.mxu0 %v827_v0  ;;  %v832_v4 = vld [vmem:[%s1071_s1 + $0x18] ss:$12 sps:$4 sm:$0xff]   ;;  %v942_v7 = vld [vmem:[%s1070_s0 + $0x8] sm:$0xff] }
   0x3   :  { %v936_v5 = vld [vmem:[%s1070_s0] sm:$0xff]  ;;  %70 = vmatpush1.bf16.msra.mxu0 %v829_v1  ;;  %v833_v8 = vld [vmem:[%s1071_s1 + $0x8] ss:$12 sps:$4 sm:$0xff]  }
   0x4   :  { %71 = vmatprep.subr.bf16.mxu0 %v830_v3  ;;  %v834_v9 = vld [vmem:[%s1071_s1 + $0x20] ss:$12 sps:$4 sm:$0xff]   ;;  %v24_v10 = vpack.c.bf16 %v942_v7, %v936_v5  ;;  %742 = vmatpush3.bf16.msra.mxu1 %v833_v8 }
   0x5   :  { %743 = vmatprep.subr.bf16.mxu1 %v886_v6 }
   0x7   :  { %72 = vmatpush1.bf16.msra.mxu0 %v832_v4 }
   0x8   :  { %749 = vmatprep.subr.bf16.mxu0 %v886_v6  ;;  %744 = vmatpush3.bf16.msra.mxu1 %v834_v9 }
   0x9   :  { %755 = vmatprep.subr.bf16.mxu1 %v886_v6 }
   0xa   :  { %674 = vmatmul.mubr.msk.bf16.vlgmr.msra.gmra.mrb[0].mxu0 %vm65_vm0, %v24_v10 }
   0xb   :  { %10 = vsyncpa [#allocation3], 0  ;;  %vm887_vm1 = vmmov 0   ;;  %vm283_vm2 = vcmask 1043456   ;;  %vm255_vm3 = vcmask 64512   ;;  %v835_v51 = vld [vmem:[%s1072_s2] sm:$0xff]  }
   0xc   :  { %745 = vmatprep.mubr.msk.bf16.mxu1 %vm887_vm1, %v886_v6  ;;  %751 = vmatprep.mubr.msk.bf16.mxu0 %vm887_vm1, %v886_v6  ;;  %v836_v55 = vld [vmem:[%s1072_s2 + $0x8] sm:$0xff]   ;;  %v837_v57 = vld [vmem:[%s1072_s2 + $0x10] sm:$0xff]   ;;  %v838_v58 = vld [vmem:[%s1072_s2 + $0x18] sm:$0xff]   ;;  %s888_s14 = smov [#allocation2]  }
   0xd   :  { %746 = vmatmul.mubr.msk.bf16.vlgmr.msra.gmra.mrb[0].mxu1 %vm65_vm0, %v24_v10  ;;  %v839_v59 = vld [vmem:[%s1072_s2 + $0x20] sm:$0xff]   ;;  %v840_v60 = vld [vmem:[%s1072_s2 + $0x28] sm:$0xff]   ;;  %v841_v61 = vld [vmem:[%s1072_s2 + $0x30] sm:$0xff]   ;;  %s657_s15 = sshll.u32 %s888_s14, 4  ;;  %s658_s15 = int_to_ptr.vmem [resolvable:$true] %s657_s15 }
   0xe   :  { %757 = vmatprep.mubr.msk.bf16.mxu1 %vm887_vm1, %v886_v6  ;;  %v842_v62 = vld [vmem:[%s1072_s2 + $0x38] sm:$0xff]   ;;  %p866_p1 = scmp.lt.s32.totalorder %s658_s15, %s658_s15 }
  0xdd   :  { %v103_v11 = vpop.f32.mrb[0].mxu0 }
  0xde   :  { %v105_v12 = vpop.f32.mrb[1].mxu0  ;;  %v703_v17 = vpack.c.bf16 %v103_v11, %v103_v11  ;;  %v843_v11 = vld [vmem:[%s1073_s3] sm:$0xff]  }
  0xdf   :  { %v705_v13 = vpack.c.bf16 %v105_v12, %v105_v12  ;;  %v107_v14 = vpop.f32.mrb[2].mxu0  ;;  %v844_v12 = vld [vmem:[%s1073_s3 + $0x8] sm:$0xff]  }
  0xe0   :  { %v109_v15 = vpop.f32.mrb[3].mxu0  ;;  %v704_v18 = vpack.c.bf16 %v107_v14, %v107_v14  ;;  %v146_v19 = vpop.f32.mrb[0].mxu1 }
  0xe1   :  { %v706_v16 = vpack.c.bf16 %v109_v15, %v109_v15  ;;  %750 = vmatpush3.bf16.xpose.msra.mxu0 %v705_v13  ;;  %v707_v20 = vpack.c.bf16 %v146_v19, %v146_v19  ;;  %v747_v21 = vpop.f32.mrb[1].mxu1  ;;  %v845_v19 = vld [vmem:[%s1074_s4] sm:$0xff]  }
  0xe2   :  { %761 = vmatprep.subr.bf16.mxu0 %v886_v6  ;;  %v149_v22 = vpop.f32.mrb[2].mxu1  ;;  %v846_v21 = vld [vmem:[%s1074_s4 + $0x8] sm:$0xff]  }
  0xe3   :  { %756 = vmatpush3.bf16.xpose.msra.mxu1 %v706_v16  ;;  %v285_v23 = vsel %vm283_vm2, %v707_v20, 0  ;;  %v708_v24 = vpack.c.bf16 %v149_v22, %v149_v22  ;;  %v748_v25 = vpop.f32.mrb[3].mxu1  ;;  %v849_v22 = vld [vmem:[%s1074_s4 + $0x20] sm:$0xff]  }
  0xe4   :  { %767 = vmatprep.subr.bf16.mxu1 %v886_v6  ;;  %v852_v25 = vld [vmem:[%s1074_s4 + $0x38] sm:$0xff]  }
  0xe5   :  { %v331_v26 = vsel %vm283_vm2, %v708_v24, 0  ;;  %v851_v24 = vld [vmem:[%s1074_s4 + $0x30] sm:$0xff]  }
  0xe8   :  { %752 = vmatmul.mubr.bf16.vlgmr.msra.gmra.mrb[4].mxu0 %v703_v17 }
  0xe9   :  { %763 = vmatprep.mubr.msk.bf16.mxu0 %vm887_vm1, %v886_v6  ;;  %762 = vmatpush3.bf16.msra.mxu0 %v285_v23  ;;  %v850_v23 = vld [vmem:[%s1074_s4 + $0x28] sm:$0xff]  }
  0xea   :  { %758 = vmatmul.mubr.bf16.vlgmr.msra.gmra.mrb[4].mxu1 %v704_v18  ;;  %773 = vmatprep.subr.bf16.mxu0 %v886_v6 }
  0xeb   :  { %769 = vmatprep.mubr.msk.bf16.mxu1 %vm887_vm1, %v886_v6  ;;  %768 = vmatpush3.bf16.msra.mxu1 %v331_v26 }
  0xec   :  { %793 = vmatprep.subr.bf16.mxu1 %v886_v6 }
 0x1bb   :  { %v209_v27 = vpop.f32.mrb[4].mxu0 }
 0x1bc   :  { %v753_v28 = vpop.f32.mrb[5].mxu0  ;;  %v256_v29 = vsel %vm255_vm3, %v209_v27, -inf }
 0x1bd   :  { %257 = vmax.xlane.f32.xlu0 %v256_v29  ;;  %v212_v30 = vpop.f32.mrb[6].mxu0  ;;  %v249_v31 = vpop.f32.mrb[4].mxu1 }
 0x1be   :  { %v754_v32 = vpop.f32.mrb[7].mxu0  ;;  %v759_v33 = vpop.f32.mrb[5].mxu1  ;;  %v259_v36 = vsel %vm255_vm3, %v249_v31, -inf }
 0x1bf   :  { %v252_v34 = vpop.f32.mrb[6].mxu1 }
 0x1c0   :  { %v760_v35 = vpop.f32.mrb[7].mxu1 }
 0x1c1   :  { %260 = vmax.xlane.f32.xlu0 %v259_v36 }
 0x24a   :  { %v258_v37 = vpop.xlane.xlu0 %257 }
 0x24b   :  { %v262_v38 = vsub.f32 %v209_v27, %v258_v37 }
 0x24d   :  { %v264_v39 = vmul.f32 1.442695, %v262_v38 }
 0x24e   :  { %v261_v40 = vpop.xlane.xlu0 %260 }
 0x24f   :  { %853 = vpow2.f32 %v264_v39  ;;  %v263_v41 = vsub.f32 %v249_v31, %v261_v40 }
 0x251   :  { %v266_v42 = vmul.f32 1.442695, %v263_v41 }
 0x253   :  { %855 = vpow2.f32 %v266_v42 }
 0x259   :  { %v854_v43 = vpop.eup %853 }
 0x25a   :  { %v268_v44 = vsel %vm255_vm3, %v854_v43, 0.0 }
 0x25b   :  { %269 = vadd.xlane.f32.xlu1 %v268_v44 }
 0x25d   :  { %v856_v45 = vpop.eup %855 }
 0x25e   :  { %v271_v46 = vsel %vm255_vm3, %v856_v45, 0.0 }
 0x25f   :  { %272 = vadd.xlane.f32.xlu1 %v271_v46 }
 0x2e8   :  { %v270_v47 = vpop.xlane.xlu1 %269 }
 0x2e9   :  { %857 = vrcp.f32 %v270_v47 }
 0x2ec   :  { %v273_v48 = vpop.xlane.xlu1 %272 }
 0x2ed   :  { %859 = vrcp.f32 %v273_v48 }
 0x2f3   :  { %v858_v49 = vpop.eup %857 }
 0x2f4   :  { %v275_v50 = vmul.f32 %v858_v49, %v854_v43 }
 0x2f6   :  { %v278_v52 = vpack.c.bf16 %v275_v50, %v275_v50 }
 0x2f7   :  { %v860_v53 = vpop.eup %859 }
 0x2f8   :  { %v277_v54 = vmul.f32 %v860_v53, %v856_v45  ;;  %764 = vmatmul.mubr.msk.bf16.vlgmr.msra.gmra.mrb[8].mxu0 %vm255_vm3, %v278_v52 }
 0x2f9   :  { %774 = vmatpush3.bf16.msra.mxu0 %v835_v51  ;;  %789 = vmatprep.mubr.msk.bf16.mxu0 %vm887_vm1, %v886_v6 }
 0x2fa   :  { %v279_v56 = vpack.c.bf16 %v277_v54, %v277_v54  ;;  %775 = vmatprep.subr.bf16.mxu0 %v886_v6 }
 0x2fc   :  { %770 = vmatmul.mubr.msk.bf16.vlgmr.msra.gmra.mrb[8].mxu1 %vm255_vm3, %v279_v56 }
 0x2fd   :  { %776 = vmatpush3.bf16.msra.mxu0 %v836_v55  ;;  %797 = vmatprep.mubr.msk.bf16.mxu1 %vm887_vm1, %v886_v6 }
 0x2fe   :  { %777 = vmatprep.subr.bf16.mxu0 %v886_v6  ;;  %794 = vmatpush3.bf16.msra.mxu1 %v843_v11 }
 0x2ff   :  { %795 = vmatprep.subr.bf16.mxu1 %v886_v6 }
 0x301   :  { %778 = vmatpush3.bf16.msra.mxu0 %v837_v57 }
 0x302   :  { %779 = vmatprep.subr.bf16.mxu0 %v886_v6  ;;  %796 = vmatpush3.bf16.msra.mxu1 %v844_v12 }
 0x303   :  { %801 = vmatprep.subr.bf16.mxu1 %v886_v6 }
 0x305   :  { %780 = vmatpush3.bf16.msra.mxu0 %v838_v58 }
 0x306   :  { %781 = vmatprep.subr.bf16.mxu0 %v886_v6 }
 0x309   :  { %782 = vmatpush3.bf16.msra.mxu0 %v839_v59 }
 0x30a   :  { %783 = vmatprep.subr.bf16.mxu0 %v886_v6 }
 0x30d   :  { %784 = vmatpush3.bf16.msra.mxu0 %v840_v60 }
 0x30e   :  { %785 = vmatprep.subr.bf16.mxu0 %v886_v6 }
 0x311   :  { %786 = vmatpush3.bf16.msra.mxu0 %v841_v61 }
 0x312   :  { %787 = vmatprep.subr.bf16.mxu0 %v886_v6 }
 0x315   :  { %788 = vmatpush3.bf16.msra.mxu0 %v842_v62 }
 0x3cb   :  { %v321_v63 = vpop.f32.mrb[8].mxu0 }
 0x3cc   :  { %v765_v0 = vpop.f32.mrb[9].mxu0 }
 0x3cd   :  { %v324_v1 = vpop.f32.mrb[10].mxu0 }
 0x3ce   :  { %v766_v2 = vpop.f32.mrb[11].mxu0 }
 0x3cf   :  { %v367_v3 = vpop.f32.mrb[8].mxu1 }
 0x3d0   :  { %v373_v4 = vpack.c.bf16 %v367_v3, %v321_v63  ;;  %v771_v8 = vpop.f32.mrb[9].mxu1 }
 0x3d1   :  { %v370_v9 = vpop.f32.mrb[10].mxu1 }
 0x3d2   :  { %v772_v10 = vpop.f32.mrb[11].mxu1  ;;  %790 = vmatmul.mubr.bf16.vlgmr.msra.gmra.mrb[12].mxu0 %v373_v4 }
 0x4a5   :  { %v472_v13 = vpop.f32.mrb[12].mxu0 }
 0x4a6   :  { %v791_v14 = vpop.f32.mrb[13].mxu0  ;;  %v479_v16 = vadd.f32 %v472_v13, %v936_v5  ;;  %v847_v5 = vld [vmem:[%s1074_s4 + $0x10] sm:$0xff]  }
 0x4a7   :  { %v475_v15 = vpop.f32.mrb[14].mxu0 }
 0x4a8   :  { %v480_v17 = vadd.f32 %v475_v15, %v942_v7  ;;  %v792_v18 = vpop.f32.mrb[15].mxu0  ;;  %v848_v7 = vld [vmem:[%s1074_s4 + $0x18] sm:$0xff]   ;;  %s861_s4 = scalar_lea.vmem %s658_s15, 256 }
 0x4a9   :  { %p862_p0 = scmp.ne.s32.totalorder %s658_s15, %s861_s4  ;;  %p867_p2 = scmp.lt.s32.totalorder %s861_s4, %s861_s4 }
 0x4aa   :  { %v481_v20 = vpack.c.bf16 %v480_v17, %v479_v16 }
 0x4ab   :  { %p868_p3 = por %p867_p2, %p866_p1 }
 0x4ac   :  { %798 = vmatmul.mubr.msk.bf16.vlgmr.msra.gmra.mrb[12].mxu1 %vm65_vm0, %v481_v20 }
 0x4ad   :  { %802 = vmatpush3.bf16.msra.mxu1 %v845_v19  ;;  %817 = vmatprep.mubr.msk.bf16.mxu1 %vm887_vm1, %v886_v6  ;;  %p869_p4 = pnand %p868_p3, %p862_p0 }
 0x4ae   :  { %803 = vmatprep.subr.bf16.mxu1 %v886_v6 }
 0x4b1   :  { %804 = vmatpush3.bf16.msra.mxu1 %v846_v21 }
 0x4b2   :  { %805 = vmatprep.subr.bf16.mxu1 %v886_v6 }
 0x4b5   :  { %806 = vmatpush3.bf16.msra.mxu1 %v847_v5 }
 0x4b6   :  { %807 = vmatprep.subr.bf16.mxu1 %v886_v6 }
 0x4b9   :  { %808 = vmatpush3.bf16.msra.mxu1 %v848_v7 }
 0x4ba   :  { %809 = vmatprep.subr.bf16.mxu1 %v886_v6 }
 0x4bd   :  { %810 = vmatpush3.bf16.msra.mxu1 %v849_v22 }
 0x4be   :  { %811 = vmatprep.subr.bf16.mxu1 %v886_v6 }
 0x4c1   :  { %812 = vmatpush3.bf16.msra.mxu1 %v850_v23 }
 0x4c2   :  { %813 = vmatprep.subr.bf16.mxu1 %v886_v6 }
 0x4c5   :  { %814 = vmatpush3.bf16.msra.mxu1 %v851_v24 }
 0x4c6   :  { %815 = vmatprep.subr.bf16.mxu1 %v886_v6 }
 0x4c9   :  { %816 = vmatpush3.bf16.msra.mxu1 %v852_v25 }
 0x57f   :  { %v535_v26 = vpop.f32.mrb[12].mxu1 }
 0x580   :  { %v799_v27 = vpop.f32.mrb[13].mxu1  ;;  %v542_v29 = vmax.f32 %v535_v26, 0.0 }
 0x581   :  { %v538_v28 = vpop.f32.mrb[14].mxu1 }
 0x582   :  { %v543_v30 = vmax.f32 %v538_v28, 0.0  ;;  %v800_v31 = vpop.f32.mrb[15].mxu1 }
 0x584   :  { %v544_v32 = vpack.c.bf16 %v543_v30, %v542_v29 }
 0x586   :  { %818 = vmatmul.mubr.bf16.vlgmr.msra.gmra.mrb[16].mxu1 %v544_v32 }
 0x659   :  { %v643_v33 = vpop.f32.mrb[16].mxu1 }
 0x65a   :  { %650 = vst.msk [vmem:[#allocation2] sm:$0xff] %vm65_vm0, %v643_v33  ;;  %v819_v6 = vpop.f32.mrb[17].mxu1 }
 0x65b   :  { %v646_v34 = vpop.f32.mrb[18].mxu1 }
 0x65c   :  { %651 = vst.msk [vmem:[#allocation2 + $0x8] sm:$0xff] %vm65_vm0, %v646_v34  ;;  %v820_v35 = vpop.f32.mrb[19].mxu1 }
 0x65d   :  { %872 = shalt.err (!%p869_p4)
}
 0x65e   :  { %s873_s18 = scalar_lea.hbm %s1075_s5, 256 }
 0x65f   :  { %p874_p5 = scmp.ne.s32.totalorder %s1075_s5, %s873_s18  ;;  %p877_p6 = scmp.lt.u32.totalorder %s873_s18, %s1075_s5 }
 0x661   :  { %p879_p7 = pnand %p877_p6, %p874_p5 }
 0x663   :  { %882 = shalt.err (!%p879_p7)
}
 0x664   :  { %s889_s23 = smov 128   ;;  %s890_s24 = smov 8  }
 0x665   :  { %663 = dma.vmem_to_hbm [thread:$0]  %s658_s15, 256, %s1075_s5, [#allocation3], %s889_s23, %s889_s23, %s890_s24  }
 0x666   :  { %883 = dma.done.wait [#allocation3], 256  }
 0x667   :  { %884 = vsyncadd [#allocation3], 4294967040 }
 0x668   :  { %667 = vsyncpa [#allocation3], 1 }

</bundles_post_ra>
